<compile_context>
chip_gen: v6e
topology: v6e:2x2x1
jax: 0.10.0
libtpu: 0.0.40
codegen_flags: <defaults>
</compile_context>

<pallas_src>
import math

import jax
import jax.numpy as jnp
from jax.experimental import pallas as pl
from jax.experimental.pallas import tpu as pltpu


def critic_kernel(x_ref, w1_ref, b1_ref, w2_ref, b2_ref, w3_ref, b3_ref, o_ref):
    # fc1 + relu  (bf16 MXU operands, f32 accumulation).  The cast stays inside
    # the kernel: a wrapper-side cast would be a separate HBM-touching XLA op.
    x = x_ref[...].astype(jnp.bfloat16)
    h1 = jnp.dot(x, w1_ref[...], preferred_element_type=jnp.float32)
    h1 = jnp.maximum(h1 + b1_ref[...], 0.0)
    # fc2 + relu
    h2 = jnp.dot(h1.astype(jnp.bfloat16), w2_ref[...],
                 preferred_element_type=jnp.float32)
    h2 = jnp.maximum(h2 + b2_ref[...], 0.0)
    # fc3 value head (out_features == 1): VPU multiply + XLU lane reduction
    # (an N=1 MXU matmul would waste 255/256 output columns).  Scalar bias
    # comes from SMEM.
    w3_row = w3_ref[...].astype(jnp.float32)                       # [1, fc2_dims]
    v = jnp.sum(h2 * w3_row, axis=-1, keepdims=True) + b3_ref[0, 0]  # [bm, 1]
    # Lane-dense store: relayout the bm-element result to a [1, bm] row so the
    # writeback is a wide contiguous store instead of a masked [bm, 1] column.
    o_ref[...] = jnp.reshape(v, (1, -1)).astype(o_ref.dtype)


def _round_up(x, m):
    return ((x + m - 1) // m) * m


def critic_forward(state, params, *, block_m=1024):
    """state: [B, input_dims] float32. Returns [B, 1] float32 values."""
    w1, b1, w2, b2, w3, b3 = params
    batch, input_dims = state.shape
    fc1_dims = w1.shape[1]
    fc2_dims = w2.shape[1]

    # ---- batch tiling -------------------------------------------------------
    # Per-grid-step overhead (~0.35us) dwarfs the per-tile compute, so use the
    # largest tiles that make sense:
    #   * tiny batches: one tile equal to the 8-padded batch (block == array).
    #   * otherwise: tiles are multiples of 128 so the [1, bm] output row
    #     stores unmasked, capped at block_m, and the batch is split into >= 2
    #     tiles when it fits so v7x's 2nd TensorCore gets work ("parallel" axis).
    bm_small = _round_up(batch, 8)
    if bm_small <= 128:
        bm = bm_small
    else:
        bm_cap = max(128, (block_m // 128) * 128)
        bm = min(bm_cap, _round_up(pl.cdiv(batch, 2), 128))
    padded_b = _round_up(batch, bm)
    if padded_b != batch:
        # Padded rows compute relu(b1)-derived garbage; they are sliced off at
        # the end and must never be reused.
        state = jnp.pad(state, ((0, padded_b - batch), (0, 0)))
    nb = padded_b // bm

    # bf16 weights: halve HBM->VMEM DMA bytes and VMEM footprint; 2x MXU rate
    # on v6e/v7x.  Biases stay f32 for the VPU add.
    w1b = w1.astype(jnp.bfloat16)
    w2b = w2.astype(jnp.bfloat16)
    w3_row = w3.reshape(1, fc2_dims).astype(jnp.bfloat16)
    b3s = b3.reshape(1, 1).astype(jnp.float32)

    const = lambda i: (0, 0)
    out = pl.pallas_call(
        critic_kernel,
        # Lane-dense output: one [1, bm] row per grid step; reshaped to
        # [batch, 1] below.
        out_shape=jax.ShapeDtypeStruct((1, padded_b), jnp.float32),
        grid=(nb,),
        in_specs=[
            pl.BlockSpec((bm, input_dims), lambda i: (i, 0)),   # state tile (pipelined)
            pl.BlockSpec((input_dims, fc1_dims), const),        # weights: VMEM-resident
            pl.BlockSpec((1, fc1_dims), const),
            pl.BlockSpec((fc1_dims, fc2_dims), const),
            pl.BlockSpec((1, fc2_dims), const),
            pl.BlockSpec((1, fc2_dims), const),                 # w3 as a [1, fc2] row
            pl.BlockSpec(memory_space=pltpu.MemorySpace.SMEM),  # scalar bias b3
        ],
        out_specs=pl.BlockSpec((1, bm), lambda i: (0, i)),
        compiler_params=pltpu.CompilerParams(
            # Shard batch tiles across both TensorCores on v7x; harmless on v5e/v6e.
            dimension_semantics=("parallel",),
            # Default scoped VMEM is ample for bm <= 2048 (f32 intermediates are
            # ~bm*256*4 B each); set vmem_limit_bytes only if block_m is raised
            # well past that (v5e default scoped limit is 16 MiB).
        ),
    )(state, w1b, b1, w2b, b2, w3_row, b3s)
    return out[0, :batch].reshape(batch, 1)


def init_params(key, input_dims, fc1_dims=256, fc2_dims=256):
    """Deterministic init mimicking nn.Linear's U(-1/sqrt(fan_in), 1/sqrt(fan_in))."""
    ks = jax.random.split(key, 6)

    def linear(kw, kb, fan_in, fan_out):
        bound = 1.0 / math.sqrt(fan_in)
        w = jax.random.uniform(kw, (fan_in, fan_out), jnp.float32, -bound, bound)
        b = jax.random.uniform(kb, (1, fan_out), jnp.float32, -bound, bound)
        return w, b

    w1, b1 = linear(ks[0], ks[1], input_dims, fc1_dims)
    w2, b2 = linear(ks[2], ks[3], fc1_dims, fc2_dims)
    w3, b3 = linear(ks[4], ks[5], fc2_dims, 1)
    return (w1, b1, w2, b2, w3, b3)


def _reference(state, params):
    """Plain-JAX reference using the same bf16-weight / f32-accum recipe."""
    w1, b1, w2, b2, w3, b3 = params
    xb = state.astype(jnp.bfloat16)
    h1 = jnp.maximum(
        jnp.dot(xb, w1.astype(jnp.bfloat16), preferred_element_type=jnp.float32) + b1, 0.0)
    h2 = jnp.maximum(
        jnp.dot(h1.astype(jnp.bfloat16), w2.astype(jnp.bfloat16),
                preferred_element_type=jnp.float32) + b2, 0.0)
    w3_row = w3.reshape(1, -1).astype(jnp.bfloat16).astype(jnp.float32)
    return jnp.sum(h2 * w3_row, axis=-1, keepdims=True) + b3.reshape(1, 1)


if __name__ == "__main__":
    key = jax.random.PRNGKey(0)
    k_param, k_s1, k_s2, k_s3 = jax.random.split(key, 4)

    input_dims = 8  # LunarLander-v2 observation dim
    params = init_params(k_param, input_dims)

    # 1) tiny batch: single tile (bm clamps to 8), block == full output row.
    s1 = jax.random.normal(k_s1, (8, input_dims), jnp.float32)
    o1 = critic_forward(s1, params)
    jax.block_until_ready(o1)
    r1 = _reference(s1, params)
    assert o1.shape == (8, 1)
    assert jnp.allclose(o1, r1, atol=1e-4, rtol=1e-4), "mismatch vs reference (small batch)"

    # 2) mid batch: two lane-dense 384-row tiles + padding; parallel grid
    #    (split across both TensorCores on v7x).
    s2 = jax.random.normal(k_s2, (520, input_dims), jnp.float32)
    o2 = critic_forward(s2, params)
    jax.block_until_ready(o2)
    r2 = _reference(s2, params)
    assert o2.shape == (520, 1)
    assert jnp.allclose(o2, r2, atol=1e-4, rtol=1e-4), "mismatch vs reference (tiled batch)"

    # 3) larger batch hitting the block_m cap (bm=1024, grid=3) + padding.
    s3 = jax.random.normal(k_s3, (2111, input_dims), jnp.float32)
    o3 = critic_forward(s3, params)
    jax.block_until_ready(o3)
    r3 = _reference(s3, params)
    assert o3.shape == (2111, 1)
    assert jnp.allclose(o3, r3, atol=1e-4, rtol=1e-4), "mismatch vs reference (capped tile)"

    print("KERNEL_OK")
</pallas_src>

<mosaic_0001>
module attributes {stable_mosaic.version = 11 : i64} {
  func.func @critic_kernel(%arg0: i32, %arg1: memref<8x8xf32, #tpu.memory_space<vmem>>, %arg2: memref<8x256xbf16, #tpu.memory_space<vmem>>, %arg3: memref<1x256xf32, #tpu.memory_space<vmem>>, %arg4: memref<256x256xbf16, #tpu.memory_space<vmem>>, %arg5: memref<1x256xf32, #tpu.memory_space<vmem>>, %arg6: memref<1x256xbf16, #tpu.memory_space<vmem>>, %arg7: memref<1x1xf32, #tpu.memory_space<smem>>, %arg8: memref<1x8xf32, #tpu.memory_space<vmem>>) attributes {dimension_semantics = [#tpu.dimension_semantics<parallel>], iteration_bounds = array<i64: 1>, scalar_prefetch = 0 : i64, scratch_operands = 0 : i64, tpu.core_type = #tpu.core_type<tc>, window_params = [{transform_indices = @transform_0, window_bounds = array<i64: 8, 8>}, {pipeline_mode = #tpu.pipeline_mode<synchronous>, transform_indices = @transform_1, window_bounds = array<i64: 8, 256>}, {pipeline_mode = #tpu.pipeline_mode<synchronous>, transform_indices = @transform_2, window_bounds = array<i64: 1, 256>}, {pipeline_mode = #tpu.pipeline_mode<synchronous>, transform_indices = @transform_3, window_bounds = array<i64: 256, 256>}, {pipeline_mode = #tpu.pipeline_mode<synchronous>, transform_indices = @transform_4, window_bounds = array<i64: 1, 256>}, {pipeline_mode = #tpu.pipeline_mode<synchronous>, transform_indices = @transform_5, window_bounds = array<i64: 1, 256>}, {transform_indices = @transform_6, window_bounds = array<i64: 1, 1>}, {transform_indices = @transform_7, window_bounds = array<i64: 1, 8>}]} {
    %c0 = arith.constant 0 : index
    %c0_0 = arith.constant 0 : index
    %0 = vector.load %arg1[%c0, %c0_0] : memref<8x8xf32, #tpu.memory_space<vmem>>, vector<8x8xf32>
    %1 = arith.truncf %0 : vector<8x8xf32> to vector<8x8xbf16>
    %c0_1 = arith.constant 0 : index
    %c0_2 = arith.constant 0 : index
    %2 = vector.load %arg2[%c0_1, %c0_2] : memref<8x256xbf16, #tpu.memory_space<vmem>>, vector<8x256xbf16>
    %cst = arith.constant dense<0.000000e+00> : vector<8x256xf32>
    %3 = tpu.matmul %1, %2, %cst {dimension_numbers = #tpu.dot_dimension_numbers<[1], [0], [0], [1], [0, 0, 1, 1], [], []>} : vector<8x8xbf16>, vector<8x256xbf16>, vector<8x256xf32> -> vector<8x256xf32>
    %c0_3 = arith.constant 0 : index
    %c0_4 = arith.constant 0 : index
    %4 = vector.load %arg3[%c0_3, %c0_4] : memref<1x256xf32, #tpu.memory_space<vmem>>, vector<1x256xf32>
    %5 = vector.broadcast %4 : vector<1x256xf32> to vector<8x256xf32>
    %6 = arith.addf %3, %5 : vector<8x256xf32>
    %cst_5 = arith.constant 0.000000e+00 : f32
    %7 = vector.broadcast %cst_5 : f32 to vector<8x256xf32>
    %8 = arith.maximumf %6, %7 : vector<8x256xf32>
    %9 = arith.truncf %8 : vector<8x256xf32> to vector<8x256xbf16>
    %c0_6 = arith.constant 0 : index
    %c0_7 = arith.constant 0 : index
    %10 = vector.load %arg4[%c0_6, %c0_7] : memref<256x256xbf16, #tpu.memory_space<vmem>>, vector<256x256xbf16>
    %cst_8 = arith.constant dense<0.000000e+00> : vector<8x256xf32>
    %11 = tpu.matmul %9, %10, %cst_8 {dimension_numbers = #tpu.dot_dimension_numbers<[1], [0], [0], [1], [0, 0, 1, 1], [], []>} : vector<8x256xbf16>, vector<256x256xbf16>, vector<8x256xf32> -> vector<8x256xf32>
    %c0_9 = arith.constant 0 : index
    %c0_10 = arith.constant 0 : index
    %12 = vector.load %arg5[%c0_9, %c0_10] : memref<1x256xf32, #tpu.memory_space<vmem>>, vector<1x256xf32>
    %13 = vector.broadcast %12 : vector<1x256xf32> to vector<8x256xf32>
    %14 = arith.addf %11, %13 : vector<8x256xf32>
    %cst_11 = arith.constant 0.000000e+00 : f32
    %15 = vector.broadcast %cst_11 : f32 to vector<8x256xf32>
    %16 = arith.maximumf %14, %15 : vector<8x256xf32>
    %c0_12 = arith.constant 0 : index
    %c0_13 = arith.constant 0 : index
    %17 = vector.load %arg6[%c0_12, %c0_13] : memref<1x256xbf16, #tpu.memory_space<vmem>>, vector<1x256xbf16>
    %18 = arith.extf %17 : vector<1x256xbf16> to vector<1x256xf32>
    %19 = vector.broadcast %18 : vector<1x256xf32> to vector<8x256xf32>
    %20 = arith.mulf %16, %19 : vector<8x256xf32>
    %cst_14 = arith.constant dense<0.000000e+00> : vector<8xf32>
    %21 = vector.multi_reduction <add>, %20, %cst_14 [1] : vector<8x256xf32> to vector<8xf32>
    %22 = vector.shape_cast %21 : vector<8xf32> to vector<8x1xf32>
    %c0_15 = arith.constant 0 : index
    %c0_16 = arith.constant 0 : index
    %23 = memref.load %arg7[%c0_15, %c0_16] : memref<1x1xf32, #tpu.memory_space<smem>>
    %24 = vector.broadcast %23 : f32 to vector<8x1xf32>
    %25 = arith.addf %22, %24 : vector<8x1xf32>
    %26 = vector.shape_cast %25 : vector<8x1xf32> to vector<1x8xf32>
    %c0_17 = arith.constant 0 : index
    %c0_18 = arith.constant 0 : index
    %27 = vector.load %arg8[%c0_17, %c0_18] : memref<1x8xf32, #tpu.memory_space<vmem>>, vector<1x8xf32>
    tpu.vector_store %arg8[%c0_17, %c0_18], %26 {strides = array<i32>} : memref<1x8xf32, #tpu.memory_space<vmem>>, vector<1x8xf32>,
    return
  }
  func.func @transform_0(%arg0: i32) -> (i32, i32) {
    %c0_i32 = arith.constant 0 : i32
    %c0_i32_0 = arith.constant 0 : i32
    return %arg0, %c0_i32 : i32, i32
  }
  func.func @transform_1(%arg0: i32) -> (i32, i32) {
    %c0_i32 = arith.constant 0 : i32
    %c0_i32_0 = arith.constant 0 : i32
    %c0_i32_1 = arith.constant 0 : i32
    return %c0_i32, %c0_i32_0 : i32, i32
  }
  func.func @transform_2(%arg0: i32) -> (i32, i32) {
    %c0_i32 = arith.constant 0 : i32
    %c0_i32_0 = arith.constant 0 : i32
    %c0_i32_1 = arith.constant 0 : i32
    return %c0_i32, %c0_i32_0 : i32, i32
  }
  func.func @transform_3(%arg0: i32) -> (i32, i32) {
    %c0_i32 = arith.constant 0 : i32
    %c0_i32_0 = arith.constant 0 : i32
    %c0_i32_1 = arith.constant 0 : i32
    return %c0_i32, %c0_i32_0 : i32, i32
  }
  func.func @transform_4(%arg0: i32) -> (i32, i32) {
    %c0_i32 = arith.constant 0 : i32
    %c0_i32_0 = arith.constant 0 : i32
    %c0_i32_1 = arith.constant 0 : i32
    return %c0_i32, %c0_i32_0 : i32, i32
  }
  func.func @transform_5(%arg0: i32) -> (i32, i32) {
    %c0_i32 = arith.constant 0 : i32
    %c0_i32_0 = arith.constant 0 : i32
    %c0_i32_1 = arith.constant 0 : i32
    return %c0_i32, %c0_i32_0 : i32, i32
  }
  func.func @transform_6(%arg0: i32) -> (i32, i32) {
    %c0_i32 = arith.constant 0 : i32
    %c0_i32_0 = arith.constant 0 : i32
    %c0_i32_1 = arith.constant 0 : i32
    return %c0_i32, %c0_i32_0 : i32, i32
  }
  func.func @transform_7(%arg0: i32) -> (i32, i32) {
    %c0_i32 = arith.constant 0 : i32
    %c0_i32_0 = arith.constant 0 : i32
    return %c0_i32, %arg0 : i32, i32
  }
}

</mosaic_0001>

<bundles_post_ra>
// kernel: tpu_custom_call.1
= control target key start
LH: loop header
LB: loop body
LE: loop exit
PB: predicated region body
PF: predicated region fallthrough
CT: control target
= control target key end

     0   :  { %13 = vsyncpa [#allocation4], 0  ;;  %s694_s0 = inlined_call_operand.hbm [shape: f32[8,8], index: 0, kind: input, shape index: {}]   ;;  %s695_s1 = inlined_call_operand.hbm [shape: bf16[8,256], index: 1, kind: input, shape index: {}]   ;;  %s696_s2 = inlined_call_operand.vmem [shape: f32[1,256], index: 2, kind: input, shape index: {}]   ;;  %s697_s3 = inlined_call_operand.hbm [shape: bf16[256,256], index: 3, kind: input, shape index: {}]   ;;  %s698_s4 = inlined_call_operand.vmem [shape: f32[1,256], index: 4, kind: input, shape index: {}]   ;;  %s699_s5 = inlined_call_operand.vmem [shape: bf16[1,256], index: 5, kind: input, shape index: {}]   ;;  %s700_s6 = inlined_call_operand.<no memory space> [shape: f32[1,1], index: 6, kind: input, shape index: {}]   ;;  %s701_s7 = inlined_call_operand.hbm [shape: f32[1,8], index: 7, kind: output, shape index: {}]  }
   0x1   :  { %14 = vsyncpa [#allocation7], 0 }
   0x2   :  { %15 = vsyncpa [#allocation5], 0  ;;  %s623_s24 = smov [#allocation6]   ;;  %s624_s26 = smov [#allocation3]  }
   0x3   :  { %s32_s25 = sshll.u32 %s623_s24, 4  ;;  %s22_s27 = sshll.u32 %s624_s26, 4  ;;  %s33_s25 = int_to_ptr.vmem [resolvable:$true] %s32_s25  ;;  %s23_s27 = int_to_ptr.vmem [resolvable:$true] %s22_s27 }
   0x4   :  { %s545_s28 = scalar_lea.vmem %s33_s25, 128  ;;  %p550_p1 = scmp.lt.s32.totalorder %s33_s25, %s33_s25 }
   0x5   :  { %p546_p0 = scmp.ne.s32.totalorder %s33_s25, %s545_s28  ;;  %p551_p2 = scmp.lt.s32.totalorder %s545_s28, %s545_s28 }
   0x7   :  { %p552_p3 = por %p551_p2, %p550_p1 }
   0x9   :  { %p553_p4 = pnand %p552_p3, %p546_p0 }
   0xb   :  { %556 = shalt.err (!%p553_p4)
}
   0xc   :  { %35 = dma.hbm_to_vmem [thread:$0]  %s695_s1, 128, %s33_s25, [#allocation7]  }
   0xd   :  { %s565_s8 = scalar_lea.vmem %s23_s27, 128  ;;  %p570_p6 = scmp.lt.s32.totalorder %s23_s27, %s23_s27 }
   0xe   :  { %p566_p5 = scmp.ne.s32.totalorder %s23_s27, %s565_s8  ;;  %p571_p7 = scmp.lt.s32.totalorder %s565_s8, %s565_s8 }
  0x10   :  { %p572_p8 = por %p571_p7, %p570_p6 }
  0x12   :  { %p573_p9 = pnand %p572_p8, %p566_p5 }
  0x14   :  { %576 = shalt.err (!%p573_p9)
}
  0x15   :  { %25 = dma.hbm_to_vmem [thread:$0]  %s694_s0, 128, %s23_s27, [#allocation4]  }
  0x16   :  { %s625_s11 = smov [#allocation8]  }
  0x17   :  { %s43_s12 = sshll.u32 %s625_s11, 4  ;;  %s44_s12 = int_to_ptr.vmem [resolvable:$true] %s43_s12 }
  0x18   :  { %s585_s13 = scalar_lea.vmem %s44_s12, 4096  ;;  %p590_p11 = scmp.lt.s32.totalorder %s44_s12, %s44_s12 }
  0x19   :  { %p586_p10 = scmp.ne.s32.totalorder %s44_s12, %s585_s13  ;;  %p591_p12 = scmp.lt.s32.totalorder %s585_s13, %s585_s13 }
  0x1b   :  { %p592_p13 = por %p591_p12, %p590_p11 }
  0x1d   :  { %p593_p0 = pnand %p592_p13, %p586_p10 }
  0x1f   :  { %596 = shalt.err (!%p593_p0)
}
  0x20   :  { %s626_s1 = smov 128   ;;  %s627_s14 = smov 8  }
  0x21   :  { %49 = dma.hbm_to_vmem [thread:$0]  %s697_s3, 4096, %s44_s12, [#allocation7], %s626_s1, %s626_s1, %s627_s14  }
  0x22   :  { %617 = dma.done.wait [#allocation4], 128  }
  0x23   :  { %618 = vsyncadd [#allocation4], 4294967168 }
  0x24   :  { %619 = dma.done.wait [#allocation7], 4224  }
  0x25   :  { %620 = vsyncadd [#allocation7], 4294963072  ;;  %v628_v0 = vmov 0   ;;  %v68_v1 = vld [vmem:[#allocation6] sm:$0xff]  ;;  %vm90_vm0 = vcmask 1043456   ;;  %v66_v2 = vld [vmem:[#allocation3] sm:$0xff]  ;;  %v71_v39 = vlaneseq }
  0x26   :  { %129 = vmatprep.mubr.bf16.mxu0 %v628_v0  ;;  %v445_v3 = vcombine.high %v68_v1, %v68_v1  ;;  %v444_v4 = vcombine.low %v68_v1, %v68_v1  ;;  %v489_v5 = vld [vmem:[#allocation8 + $0x74] ss:$8 sps:$4 sm:$0xff]   ;;  %v491_v6 = vld [vmem:[#allocation8 + $0x70] ss:$8 sps:$4 sm:$0xff]   ;;  %v492_v7 = vld [vmem:[#allocation8 + $0x64] ss:$8 sps:$4 sm:$0xff]   ;;  %v67_v9 = vpack.c.bf16 %v66_v2, %v66_v2 }
  0x27   :  { %346 = vmatprep.subr.bf16.mxu1 %v489_v5  ;;  %vm86_vm1 = vcmask 64512   ;;  %v494_v10 = vld [vmem:[#allocation8 + $0x60] ss:$8 sps:$4 sm:$0xff]   ;;  %v495_v11 = vld [vmem:[#allocation8 + $0x54] ss:$8 sps:$4 sm:$0xff]   ;;  %v72_v40 = vshrl.u32 %v71_v39, 7 }
  0x28   :  { %446 = vmatprep.subr.msk.bf16.mxu0 %vm90_vm0, %v445_v3  ;;  %v92_v8 = vsel %vm90_vm0, %v444_v4, 0  ;;  %347 = vmatpush1.bf16.msra.mxu1 %v491_v6  ;;  %v497_v12 = vld [vmem:[#allocation8 + $0x50] ss:$8 sps:$4 sm:$0xff]   ;;  %v498_v13 = vld [vmem:[#allocation8 + $0x44] ss:$8 sps:$4 sm:$0xff]   ;;  %s629_s20 = smov [#allocation9]  }
  0x29   :  { %112 = vmatpush1.bf16.msra.mxu0 %v92_v8  ;;  %348 = vmatprep.subr.bf16.mxu1 %v492_v7  ;;  %v500_v14 = vld [vmem:[#allocation8 + $0x40] ss:$8 sps:$4 sm:$0xff]   ;;  %v501_v15 = vld [vmem:[#allocation8 + $0x34] ss:$8 sps:$4 sm:$0xff]   ;;  %v503_v16 = vld [vmem:[#allocation8 + $0x30] ss:$8 sps:$4 sm:$0xff]  }
  0x2a   :  { %v504_v17 = vld [vmem:[#allocation8 + $0x24] ss:$8 sps:$4 sm:$0xff]   ;;  %v506_v18 = vld [vmem:[#allocation8 + $0x20] ss:$8 sps:$4 sm:$0xff]   ;;  %v507_v19 = vld [vmem:[#allocation8 + $0x14] ss:$8 sps:$4 sm:$0xff]  }
  0x2b   :  { %v509_v20 = vld [vmem:[#allocation8 + $0x10] ss:$8 sps:$4 sm:$0xff]   ;;  %v510_v21 = vld [vmem:[#allocation8 + $0x4] ss:$8 sps:$4 sm:$0xff]   ;;  %v512_v22 = vld [vmem:[#allocation8] ss:$8 sps:$4 sm:$0xff]  }
  0x2c   :  { %447 = vmatmul.mubr.msk.bf16.vlgmr.msra.gmra.mxu0 %vm86_vm1, %v67_v9  ;;  %349 = vmatpush1.bf16.msra.mxu1 %v494_v10  ;;  %v513_v23 = vld [vmem:[#allocation8 + $0xf4] ss:$8 sps:$4 sm:$0xff]   ;;  %v515_v24 = vld [vmem:[#allocation8 + $0xf0] ss:$8 sps:$4 sm:$0xff]   ;;  %v516_v25 = vld [vmem:[#allocation8 + $0xe4] ss:$8 sps:$4 sm:$0xff]  }
  0x2d   :  { %350 = vmatprep.subr.bf16.mxu1 %v495_v11  ;;  %v518_v26 = vld [vmem:[#allocation8 + $0xe0] ss:$8 sps:$4 sm:$0xff]   ;;  %v519_v27 = vld [vmem:[#allocation8 + $0xd4] ss:$8 sps:$4 sm:$0xff]   ;;  %v521_v28 = vld [vmem:[#allocation8 + $0xd0] ss:$8 sps:$4 sm:$0xff]  }
  0x2e   :  { %v522_v29 = vld [vmem:[#allocation8 + $0xc4] ss:$8 sps:$4 sm:$0xff]   ;;  %v524_v30 = vld [vmem:[#allocation8 + $0xc0] ss:$8 sps:$4 sm:$0xff]   ;;  %v525_v31 = vld [vmem:[#allocation8 + $0xb4] ss:$8 sps:$4 sm:$0xff]  }
  0x2f   :  { %v527_v32 = vld [vmem:[#allocation8 + $0xb0] ss:$8 sps:$4 sm:$0xff]   ;;  %v528_v33 = vld [vmem:[#allocation8 + $0xa4] ss:$8 sps:$4 sm:$0xff]   ;;  %v530_v34 = vld [vmem:[#allocation8 + $0xa0] ss:$8 sps:$4 sm:$0xff]  }
  0x30   :  { %351 = vmatpush1.bf16.msra.mxu1 %v497_v12  ;;  %v531_v35 = vld [vmem:[#allocation8 + $0x94] ss:$8 sps:$4 sm:$0xff]   ;;  %v533_v36 = vld [vmem:[#allocation8 + $0x90] ss:$8 sps:$4 sm:$0xff]   ;;  %v534_v37 = vld [vmem:[#allocation8 + $0x84] ss:$8 sps:$4 sm:$0xff]  }
  0x31   :  { %352 = vmatprep.subr.bf16.mxu1 %v498_v13  ;;  %v536_v38 = vld [vmem:[#allocation8 + $0x80] ss:$8 sps:$4 sm:$0xff]   ;;  %v73_v41 = vsub.s32 0, %v72_v40  ;;  %v69_v42 = vld [vmem:[%s696_s2] sm:$0x3]  ;;  %v77_v43 = vsub.s32 1, %v72_v40 }
  0x32   :  { %v389_v56 = vld [vmem:[%s699_s5] sm:$0x3]  ;;  %v398_v59 = vsub.s32 2, %v72_v40  ;;  %v420_v13 = vand.u32 127, %v71_v39  ;;  %s434_s21 = sshll.u32 %s629_s20, 4  ;;  %vm426_vm2 = vcmask 57344   ;;  %s435_s21 = int_to_ptr.vmem [resolvable:$true] %s434_s21 }
  0x33   :  { %v74_v44 = vrot.slane %v69_v42, %v73_v41  ;;  %v78_v45 = vrot.slane %v69_v42, %v77_v43  ;;  %v174_v57 = vld [vmem:[%s698_s4] sm:$0x3]  ;;  %v390_v58 = vunpack.c.l.bf16 %v389_v56  ;;  %s597_s22 = scalar_lea.vmem %s435_s21, 16  ;;  %s601_s23 = scalar_lea.vmem %s435_s21, 32 }
  0x34   :  { %353 = vmatpush1.bf16.msra.mxu1 %v500_v14  ;;  %v179_v60 = vrot.slane %v174_v57, %v73_v41  ;;  %v183_v61 = vrot.slane %v174_v57, %v77_v43  ;;  %v416_v14 = vstv %s700_s6  ;;  %p598_p1 = scmp.ne.s32.totalorder %s435_s21, %s597_s22  ;;  %p602_p2 = scmp.lt.s32.totalorder %s435_s21, %s435_s21 }
  0x35   :  { %354 = vmatprep.subr.bf16.mxu1 %v501_v15  ;;  %v395_v62 = vrot.slane %v390_v58, %v73_v41  ;;  %v399_v63 = vrot.slane %v390_v58, %v398_v59  ;;  %v423_v15 = vsub.s32 %v420_v13, %v72_v40  ;;  %p603_p3 = scmp.lt.s32.totalorder %s601_s23, %s597_s22 }
  0x37   :  { %v405_v5 = vrot.slane %v395_v62, %v73_v41  ;;  %v409_v6 = vrot.slane %v399_v63, %v73_v41  ;;  %p604_p4 = por %p603_p3, %p602_p2 }
  0x38   :  { %355 = vmatpush1.bf16.msra.mxu1 %v503_v16 }
  0x39   :  { %356 = vmatprep.subr.bf16.mxu1 %v504_v17  ;;  %p605_p5 = pnand %p604_p4, %p598_p1 }
  0x3c   :  { %357 = vmatpush1.bf16.msra.mxu1 %v506_v18 }
  0x3d   :  { %358 = vmatprep.subr.bf16.mxu1 %v507_v19 }
  0x40   :  { %359 = vmatpush1.bf16.msra.mxu1 %v509_v20 }
  0x41   :  { %360 = vmatprep.subr.bf16.mxu1 %v510_v21 }
  0x44   :  { %361 = vmatpush1.bf16.msra.mxu1 %v512_v22 }
  0x45   :  { %362 = vmatprep.subr.bf16.mxu1 %v513_v23 }
  0x48   :  { %363 = vmatpush2.bf16.msra.mxu1 %v515_v24 }
  0x49   :  { %364 = vmatprep.subr.bf16.mxu1 %v516_v25 }
  0x4c   :  { %365 = vmatpush2.bf16.msra.mxu1 %v518_v26 }
  0x4d   :  { %366 = vmatprep.subr.bf16.mxu1 %v519_v27 }
  0x50   :  { %367 = vmatpush2.bf16.msra.mxu1 %v521_v28 }
  0x51   :  { %368 = vmatprep.subr.bf16.mxu1 %v522_v29 }
  0x54   :  { %369 = vmatpush2.bf16.msra.mxu1 %v524_v30 }
  0x55   :  { %370 = vmatprep.subr.bf16.mxu1 %v525_v31 }
  0x58   :  { %371 = vmatpush2.bf16.msra.mxu1 %v527_v32 }
  0x59   :  { %372 = vmatprep.subr.bf16.mxu1 %v528_v33 }
  0x5c   :  { %373 = vmatpush2.bf16.msra.mxu1 %v530_v34 }
  0x5d   :  { %374 = vmatprep.subr.bf16.mxu1 %v531_v35 }
  0x60   :  { %375 = vmatpush2.bf16.msra.mxu1 %v533_v36 }
  0x61   :  { %376 = vmatprep.subr.bf16.mxu1 %v534_v37 }
  0x64   :  { %377 = vmatpush2.bf16.msra.mxu1 %v536_v38 }
  0xec   :  { %v131_v46 = vpop.f32.mrf.mxu0 }
  0xed   :  { %v132_v47 = vadd.f32 %v131_v46, %v74_v44 }
  0xee   :  { %v133_v48 = vpop.f32.mrf.mxu0 }
  0xef   :  { %v134_v49 = vadd.f32 %v133_v48, %v78_v45  ;;  %v138_v50 = vmax.f32 %v132_v47, 0.0 }
  0xf0   :  { %v135_v51 = vpop.f32.mrf.mxu0 }
  0xf1   :  { %v139_v52 = vmax.f32 %v134_v49, 0.0  ;;  %v140_v55 = vpack.c.bf16 %v138_v50, %v138_v50 }
  0xf2   :  { %v136_v53 = vpop.f32.mrf.mxu0 }
  0xf3   :  { %v141_v54 = vpack.c.bf16 %v139_v52, %v139_v52 }
  0xf5   :  { %378 = vmatprep.mubr.bf16.mxu1 %v141_v54 }
  0xf6   :  { %379 = vmatmul.mubr.bf16.vlgmr.msra.gmra.mxu1 %v140_v55 }
 0x1b6   :  { %v380_v0 = vpop.f32.mrf.mxu1 }
 0x1b7   :  { %v381_v1 = vadd.f32 %v380_v0, %v179_v60 }
 0x1b8   :  { %v382_v2 = vpop.f32.mrf.mxu1 }
 0x1b9   :  { %v387_v3 = vmax.f32 %v381_v1, 0.0  ;;  %v383_v4 = vadd.f32 %v382_v2, %v183_v61 }
 0x1ba   :  { %v384_v7 = vpop.f32.mrf.mxu1 }
 0x1bb   :  { %v388_v8 = vmax.f32 %v383_v4, 0.0  ;;  %v410_v10 = vmul.f32 %v405_v5, %v387_v3 }
 0x1bc   :  { %v385_v9 = vpop.f32.mrf.mxu1 }
 0x1bd   :  { %v411_v11 = vmul.f32 %v409_v6, %v388_v8 }
 0x1bf   :  { %v412_v12 = vadd.f32 %v411_v11, %v410_v10 }
 0x1c1   :  { %413 = vadd.xlane.f32.xlu0 %v412_v12 }
 0x24a   :  { %v414_v16 = vpop.xlane.xlu0 %413 }
 0x24b   :  { %v417_v17 = vadd.f32 %v416_v14, %v414_v16 }
 0x24d   :  { %v424_v18 = vrot.slane %v417_v17, %v423_v15 }
 0x24f   :  { %427 = vst.msk [vmem:[#allocation9] sm:$0x1] %vm426_vm2, %v424_v18 }
 0x250   :  { %608 = shalt.err (!%p605_p5)
}
 0x251   :  { %437 = dma.vmem_to_hbm [thread:$0]  %s435_s21, 16, %s701_s7, [#allocation5]  }
 0x252   :  { %621 = dma.done.wait [#allocation5], 16  }
 0x253   :  { %622 = vsyncadd [#allocation5], 4294967280 }
 0x254   :  { %441 = vsyncpa [#allocation4], 1 }
 0x255   :  { %442 = vsyncpa [#allocation7], 1 }
 0x256   :  { %443 = vsyncpa [#allocation5], 1 }

</bundles_post_ra>
